<compile_context>
chip_gen: v6e
topology: v6e:2x2x1
jax: 0.10.0
libtpu: 0.0.40
codegen_flags: <defaults>
</compile_context>

<pallas_src>
import jax
import jax.numpy as jnp
from jax.experimental import pallas as pl
from jax.experimental.pallas import tpu as pltpu


def _round_up(x, m):
    return (x + m - 1) // m * m


def resnet_decoder_kernel(x_ref, w1_ref, b1_ref, w2_ref, b2_ref, o_ref):
    # First linear (MXU, f32 accumulate) + bias + ReLU in f32.
    h = jnp.dot(x_ref[...], w1_ref[...], preferred_element_type=jnp.float32)
    h = jnp.maximum(h + b1_ref[...].astype(jnp.float32), 0.0)

    # Second linear: feed the MXU in the weight dtype (bf16 at prod), accumulate f32.
    y = jnp.dot(h.astype(w2_ref.dtype), w2_ref[...],
                preferred_element_type=jnp.float32)
    y = y + b2_ref[...].astype(jnp.float32)

    # F.normalize(y, dim=1, eps=1e-12)  ==  y * rsqrt(max(sum(y^2), 1e-24)).
    sumsq = jnp.sum(y * y, axis=1, keepdims=True)
    o_ref[...] = (y * jax.lax.rsqrt(jnp.maximum(sumsq, 1e-24))).astype(o_ref.dtype)


def resnet_decoder(x, w1, b1, w2, b2, *, tile_b=256):
    """x: (B, dim_in); w1: (dim_in, dim_in); b1: (dim_in,);
    w2: (feat_dim, dim_in); b2: (feat_dim,). Returns (B, feat_dim)."""
    B, D = x.shape
    F_out = w2.shape[0]

    # MXU/lane-dense padding: contraction and output dims to multiples of 128,
    # batch to a multiple of the (8-aligned) batch tile.
    D_pad = _round_up(D, 128)
    F_pad = _round_up(F_out, 128)
    TB = min(tile_b, _round_up(B, 8))
    B_pad = _round_up(B, TB)

    # Zero-pad operands (one-time, outside the kernel). Zero pad columns keep
    # padded hidden units and padded output columns exactly zero, so the row
    # norm is unaffected.
    x_p = jnp.zeros((B_pad, D_pad), x.dtype).at[:B, :D].set(x)
    w1t = jnp.zeros((D_pad, D_pad), w1.dtype).at[:D, :D].set(w1.T)       # (in, out)
    w2t = jnp.zeros((D_pad, F_pad), w2.dtype).at[:D, :F_out].set(w2.T)   # (in, out)
    b1_p = jnp.zeros((1, D_pad), jnp.float32).at[0, :D].set(b1.astype(jnp.float32))
    b2_p = jnp.zeros((1, F_pad), jnp.float32).at[0, :F_out].set(b2.astype(jnp.float32))

    num_tiles = B_pad // TB
    itemsize = jnp.dtype(x.dtype).itemsize
    cost = pl.CostEstimate(
        flops=2 * B_pad * D_pad * (D_pad + F_pad),
        transcendentals=B_pad,  # one rsqrt per row
        bytes_accessed=(x_p.size + w1t.size + w2t.size) * itemsize
        + (b1_p.size + b2_p.size) * 4 + B_pad * F_pad * itemsize,
    )

    out_p = pl.pallas_call(
        resnet_decoder_kernel,
        out_shape=jax.ShapeDtypeStruct((B_pad, F_pad), x.dtype),
        grid=(num_tiles,),
        in_specs=[
            pl.BlockSpec((TB, D_pad), lambda i: (i, 0)),       # x tile, pipelined
            pl.BlockSpec((D_pad, D_pad), lambda i: (0, 0)),    # W1^T, VMEM-resident
            pl.BlockSpec((1, D_pad), lambda i: (0, 0)),        # b1
            pl.BlockSpec((D_pad, F_pad), lambda i: (0, 0)),    # W2^T, VMEM-resident
            pl.BlockSpec((1, F_pad), lambda i: (0, 0)),        # b2
        ],
        out_specs=pl.BlockSpec((TB, F_pad), lambda i: (i, 0)),
        compiler_params=pltpu.CompilerParams(
            dimension_semantics=("parallel",),
        ),
        cost_estimate=cost,
    )(x_p, w1t, b1_p, w2t, b2_p)

    return out_p[:B, :F_out]
    # TODO(synk): for production dim_in large enough that the full (D,D) weight +
    # activations exceed v7x's 64 MiB VMEM, add an "arbitrary" K grid axis with a
    # VMEM f32 accumulator (pl.when init/finalize) instead of resident weights.


def resnet_decoder_ref(x, w1, b1, w2, b2):
    """Pure-JAX reference for correctness checking."""
    h = jnp.maximum(x @ w1.T + b1, 0.0)
    y = h @ w2.T + b2
    norm = jnp.sqrt(jnp.sum(y * y, axis=1, keepdims=True))
    return y / jnp.maximum(norm, 1e-12)


if __name__ == "__main__":
    # Small, forward-consistent shapes: in_features (dim_in) = 32, feat_dim = 16, batch = 8.
    B, DIM_IN, FEAT_DIM = 8, 32, 16

    key = jax.random.PRNGKey(0)
    kx, kw1, kb1, kw2, kb2 = jax.random.split(key, 5)

    x = jax.random.normal(kx, (B, DIM_IN), dtype=jnp.float32)
    # Synthetic params (shapes follow nn.Linear's (out, in) + (out,)).
    w1 = jax.random.normal(kw1, (DIM_IN, DIM_IN), dtype=jnp.float32) * (1.0 / jnp.sqrt(DIM_IN))
    b1 = jax.random.normal(kb1, (DIM_IN,), dtype=jnp.float32) * 0.01
    w2 = jax.random.normal(kw2, (FEAT_DIM, DIM_IN), dtype=jnp.float32) * (1.0 / jnp.sqrt(DIM_IN))
    b2 = jax.random.normal(kb2, (FEAT_DIM,), dtype=jnp.float32) * 0.01

    out = resnet_decoder(x, w1, b1, w2, b2)
    out = jax.block_until_ready(out)

    ref = resnet_decoder_ref(x, w1, b1, w2, b2)
    assert out.shape == (B, FEAT_DIM)
    assert jnp.allclose(out, ref, atol=1e-5, rtol=1e-5), "mismatch vs reference"

    print("KERNEL_OK")
</pallas_src>

<mosaic_0001>
module attributes {stable_mosaic.version = 11 : i64} {
  func.func @resnet_decoder_kernel(%arg0: i32, %arg1: memref<8x128xf32, #tpu.memory_space<vmem>>, %arg2: memref<128x128xf32, #tpu.memory_space<vmem>>, %arg3: memref<1x128xf32, #tpu.memory_space<vmem>>, %arg4: memref<128x128xf32, #tpu.memory_space<vmem>>, %arg5: memref<1x128xf32, #tpu.memory_space<vmem>>, %arg6: memref<8x128xf32, #tpu.memory_space<vmem>>) attributes {dimension_semantics = [#tpu.dimension_semantics<parallel>], iteration_bounds = array<i64: 1>, scalar_prefetch = 0 : i64, scratch_operands = 0 : i64, tpu.core_type = #tpu.core_type<tc>, window_params = [{transform_indices = @transform_0, window_bounds = array<i64: 8, 128>}, {pipeline_mode = #tpu.pipeline_mode<synchronous>, transform_indices = @transform_1, window_bounds = array<i64: 128, 128>}, {pipeline_mode = #tpu.pipeline_mode<synchronous>, transform_indices = @transform_2, window_bounds = array<i64: 1, 128>}, {pipeline_mode = #tpu.pipeline_mode<synchronous>, transform_indices = @transform_3, window_bounds = array<i64: 128, 128>}, {pipeline_mode = #tpu.pipeline_mode<synchronous>, transform_indices = @transform_4, window_bounds = array<i64: 1, 128>}, {transform_indices = @transform_5, window_bounds = array<i64: 8, 128>}]} {
    %c0 = arith.constant 0 : index
    %c0_0 = arith.constant 0 : index
    %0 = vector.load %arg1[%c0, %c0_0] : memref<8x128xf32, #tpu.memory_space<vmem>>, vector<8x128xf32>
    %c0_1 = arith.constant 0 : index
    %c0_2 = arith.constant 0 : index
    %1 = vector.load %arg2[%c0_1, %c0_2] : memref<128x128xf32, #tpu.memory_space<vmem>>, vector<128x128xf32>
    %cst = arith.constant dense<0.000000e+00> : vector<8x128xf32>
    %2 = tpu.matmul %0, %1, %cst {dimension_numbers = #tpu.dot_dimension_numbers<[1], [0], [0], [1], [0, 0, 1, 1], [], []>} : vector<8x128xf32>, vector<128x128xf32>, vector<8x128xf32> -> vector<8x128xf32>
    %c0_3 = arith.constant 0 : index
    %c0_4 = arith.constant 0 : index
    %3 = vector.load %arg3[%c0_3, %c0_4] : memref<1x128xf32, #tpu.memory_space<vmem>>, vector<1x128xf32>
    %4 = vector.broadcast %3 : vector<1x128xf32> to vector<8x128xf32>
    %5 = arith.addf %2, %4 : vector<8x128xf32>
    %cst_5 = arith.constant 0.000000e+00 : f32
    %6 = vector.broadcast %cst_5 : f32 to vector<8x128xf32>
    %7 = arith.maximumf %5, %6 : vector<8x128xf32>
    %c0_6 = arith.constant 0 : index
    %c0_7 = arith.constant 0 : index
    %8 = vector.load %arg4[%c0_6, %c0_7] : memref<128x128xf32, #tpu.memory_space<vmem>>, vector<128x128xf32>
    %cst_8 = arith.constant dense<0.000000e+00> : vector<8x128xf32>
    %9 = tpu.matmul %7, %8, %cst_8 {dimension_numbers = #tpu.dot_dimension_numbers<[1], [0], [0], [1], [0, 0, 1, 1], [], []>} : vector<8x128xf32>, vector<128x128xf32>, vector<8x128xf32> -> vector<8x128xf32>
    %c0_9 = arith.constant 0 : index
    %c0_10 = arith.constant 0 : index
    %10 = vector.load %arg5[%c0_9, %c0_10] : memref<1x128xf32, #tpu.memory_space<vmem>>, vector<1x128xf32>
    %11 = vector.broadcast %10 : vector<1x128xf32> to vector<8x128xf32>
    %12 = arith.addf %9, %11 : vector<8x128xf32>
    %13 = arith.mulf %12, %12 : vector<8x128xf32>
    %cst_11 = arith.constant dense<0.000000e+00> : vector<8xf32>
    %14 = vector.multi_reduction <add>, %13, %cst_11 [1] : vector<8x128xf32> to vector<8xf32>
    %15 = vector.shape_cast %14 : vector<8xf32> to vector<8x1xf32>
    %cst_12 = arith.constant 1.000000e-24 : f32
    %16 = vector.broadcast %cst_12 : f32 to vector<8x1xf32>
    %17 = arith.maximumf %15, %16 : vector<8x1xf32>
    %18 = math.rsqrt %17 : vector<8x1xf32>
    %19 = vector.broadcast %18 : vector<8x1xf32> to vector<8x128xf32>
    %20 = arith.mulf %12, %19 : vector<8x128xf32>
    %c0_13 = arith.constant 0 : index
    %c0_14 = arith.constant 0 : index
    %21 = vector.load %arg6[%c0_13, %c0_14] : memref<8x128xf32, #tpu.memory_space<vmem>>, vector<8x128xf32>
    tpu.vector_store %arg6[%c0_13, %c0_14], %20 {strides = array<i32>} : memref<8x128xf32, #tpu.memory_space<vmem>>, vector<8x128xf32>,
    return
  }
  func.func @transform_0(%arg0: i32) -> (i32, i32) {
    %c0_i32 = arith.constant 0 : i32
    %c0_i32_0 = arith.constant 0 : i32
    return %arg0, %c0_i32 : i32, i32
  }
  func.func @transform_1(%arg0: i32) -> (i32, i32) {
    %c0_i32 = arith.constant 0 : i32
    %c0_i32_0 = arith.constant 0 : i32
    %c0_i32_1 = arith.constant 0 : i32
    return %c0_i32, %c0_i32_0 : i32, i32
  }
  func.func @transform_2(%arg0: i32) -> (i32, i32) {
    %c0_i32 = arith.constant 0 : i32
    %c0_i32_0 = arith.constant 0 : i32
    %c0_i32_1 = arith.constant 0 : i32
    return %c0_i32, %c0_i32_0 : i32, i32
  }
  func.func @transform_3(%arg0: i32) -> (i32, i32) {
    %c0_i32 = arith.constant 0 : i32
    %c0_i32_0 = arith.constant 0 : i32
    %c0_i32_1 = arith.constant 0 : i32
    return %c0_i32, %c0_i32_0 : i32, i32
  }
  func.func @transform_4(%arg0: i32) -> (i32, i32) {
    %c0_i32 = arith.constant 0 : i32
    %c0_i32_0 = arith.constant 0 : i32
    %c0_i32_1 = arith.constant 0 : i32
    return %c0_i32, %c0_i32_0 : i32, i32
  }
  func.func @transform_5(%arg0: i32) -> (i32, i32) {
    %c0_i32 = arith.constant 0 : i32
    %c0_i32_0 = arith.constant 0 : i32
    return %arg0, %c0_i32 : i32, i32
  }
}

</mosaic_0001>

<bundles_post_ra>
// kernel: tpu_custom_call.1
= control target key start
LH: loop header
LB: loop body
LE: loop exit
PB: predicated region body
PF: predicated region fallthrough
CT: control target
= control target key end

     0   :  { %10 = vsyncpa [#allocation3], 0  ;;  %s563_s0 = inlined_call_operand.hbm [shape: f32[8,128], index: 0, kind: input, shape index: {}]   ;;  %s564_s1 = inlined_call_operand.hbm [shape: f32[128,128], index: 1, kind: input, shape index: {}]   ;;  %s565_s2 = inlined_call_operand.vmem [shape: f32[1,128], index: 2, kind: input, shape index: {}]   ;;  %s566_s3 = inlined_call_operand.hbm [shape: f32[128,128], index: 3, kind: input, shape index: {}]   ;;  %s567_s4 = inlined_call_operand.vmem [shape: f32[1,128], index: 4, kind: input, shape index: {}]   ;;  %s568_s5 = inlined_call_operand.hbm [shape: f32[8,128], index: 5, kind: output, shape index: {}]  }
   0x1   :  { %11 = vsyncpa [#allocation6], 0 }
   0x2   :  { %12 = vsyncpa [#allocation4], 0  ;;  %s473_s18 = smov [#allocation5]  }
   0x3   :  { %s28_s19 = sshll.u32 %s473_s18, 4  ;;  %s29_s19 = int_to_ptr.vmem [resolvable:$true] %s28_s19 }
   0x4   :  { %s395_s20 = scalar_lea.vmem %s29_s19, 2048  ;;  %p400_p1 = scmp.lt.s32.totalorder %s29_s19, %s29_s19 }
   0x5   :  { %p396_p0 = scmp.ne.s32.totalorder %s29_s19, %s395_s20  ;;  %p401_p2 = scmp.lt.s32.totalorder %s395_s20, %s395_s20 }
   0x7   :  { %p402_p3 = por %p401_p2, %p400_p1 }
   0x9   :  { %p403_p4 = pnand %p402_p3, %p396_p0 }
   0xb   :  { %406 = shalt.err (!%p403_p4)
}
   0xc   :  { %s474_s21 = smov 128   ;;  %s475_s22 = smov 8  }
   0xd   :  { %34 = dma.hbm_to_vmem [thread:$0]  %s564_s1, 2048, %s29_s19, [#allocation6], %s474_s21, %s474_s21, %s475_s22  }
   0xe   :  { %s476_s25 = smov [#allocation2]   ;;  %s477_s27 = smov [#allocation7]  }
   0xf   :  { %s19_s26 = sshll.u32 %s476_s25, 4  ;;  %s42_s28 = sshll.u32 %s477_s27, 4  ;;  %s20_s26 = int_to_ptr.vmem [resolvable:$true] %s19_s26  ;;  %s43_s28 = int_to_ptr.vmem [resolvable:$true] %s42_s28 }
  0x10   :  { %s415_s29 = scalar_lea.vmem %s20_s26, 128  ;;  %p420_p6 = scmp.lt.s32.totalorder %s20_s26, %s20_s26 }
  0x11   :  { %p416_p5 = scmp.ne.s32.totalorder %s20_s26, %s415_s29  ;;  %p421_p7 = scmp.lt.s32.totalorder %s415_s29, %s415_s29 }
  0x13   :  { %p422_p8 = por %p421_p7, %p420_p6 }
  0x15   :  { %p423_p9 = pnand %p422_p8, %p416_p5 }
  0x17   :  { %426 = shalt.err (!%p423_p9)
}
  0x18   :  { %22 = dma.hbm_to_vmem [thread:$0]  %s563_s0, 128, %s20_s26, [#allocation3]  }
  0x19   :  { %s435_s7 = scalar_lea.vmem %s43_s28, 2048  ;;  %p440_p11 = scmp.lt.s32.totalorder %s43_s28, %s43_s28 }
  0x1a   :  { %p436_p10 = scmp.ne.s32.totalorder %s43_s28, %s435_s7  ;;  %p441_p12 = scmp.lt.s32.totalorder %s435_s7, %s435_s7 }
  0x1c   :  { %p442_p13 = por %p441_p12, %p440_p11 }
  0x1e   :  { %p443_p0 = pnand %p442_p13, %p436_p10 }
  0x20   :  { %446 = shalt.err (!%p443_p0)
}
  0x21   :  { %48 = dma.hbm_to_vmem [thread:$0]  %s566_s3, 2048, %s43_s28, [#allocation6], %s474_s21, %s474_s21, %s475_s22  }
  0x22   :  { %467 = dma.done.wait [#allocation3], 128  }
  0x23   :  { %468 = vsyncadd [#allocation3], 4294967168 }
  0x24   :  { %469 = dma.done.wait [#allocation6], 4096  }
  0x25   :  { %470 = vsyncadd [#allocation6], 4294963200  ;;  %v478_v0 = vmov 0.0   ;;  %vm479_vm0 = vmmov 0   ;;  %v76_v1 = vld [vmem:[#allocation5 + $0x78] sm:$0xff]  ;;  %v75_v2 = vld [vmem:[#allocation5 + $0x70] sm:$0xff] }
  0x26   :  { %307 = vmatprep.subr.mxu0 %v478_v0  ;;  %339 = vmatprep.mubr.msk.f32.mxu0 %vm479_vm0, %v478_v0  ;;  %v74_v3 = vld [vmem:[#allocation5 + $0x68] sm:$0xff]  ;;  %v73_v4 = vld [vmem:[#allocation5 + $0x60] sm:$0xff]  ;;  %v170_v5 = vld [vmem:[#allocation7 + $0x78] sm:$0xff]  ;;  %s480_s11 = smov [#allocation8]  }
  0x27   :  { %342 = vmatprep.subr.mxu1 %v478_v0  ;;  %374 = vmatprep.mubr.msk.f32.mxu1 %vm479_vm0, %v478_v0  ;;  %v72_v6 = vld [vmem:[#allocation5 + $0x58] sm:$0xff]  ;;  %v169_v7 = vld [vmem:[#allocation7 + $0x70] sm:$0xff]  ;;  %v168_v8 = vld [vmem:[#allocation7 + $0x68] sm:$0xff]  ;;  %s261_s12 = sshll.u32 %s480_s11, 4  ;;  %s262_s12 = int_to_ptr.vmem [resolvable:$true] %s261_s12 }
  0x28   :  { %308 = vmatpush3.msra.mxu0 %v76_v1  ;;  %343 = vmatpush3.msra.mxu1 %v170_v5  ;;  %v71_v9 = vld [vmem:[#allocation5 + $0x50] sm:$0xff]  ;;  %v167_v10 = vld [vmem:[#allocation7 + $0x60] sm:$0xff]  ;;  %v70_v11 = vld [vmem:[#allocation5 + $0x48] sm:$0xff]  ;;  %p452_p2 = scmp.lt.s32.totalorder %s262_s12, %s262_s12 }
  0x29   :  { %309 = vmatprep.subr.mxu0 %v478_v0  ;;  %344 = vmatprep.subr.mxu1 %v478_v0  ;;  %v166_v12 = vld [vmem:[#allocation7 + $0x58] sm:$0xff]  ;;  %v69_v13 = vld [vmem:[#allocation5 + $0x40] sm:$0xff]  ;;  %v165_v14 = vld [vmem:[#allocation7 + $0x50] sm:$0xff] }
  0x2a   :  { %310 = vmatpush3.msra.mxu0 %v75_v2  ;;  %345 = vmatpush3.msra.mxu1 %v169_v7  ;;  %v68_v15 = vld [vmem:[#allocation5 + $0x38] sm:$0xff]  ;;  %v164_v16 = vld [vmem:[#allocation7 + $0x48] sm:$0xff]  ;;  %v67_v17 = vld [vmem:[#allocation5 + $0x30] sm:$0xff] }
  0x2b   :  { %311 = vmatprep.subr.mxu0 %v478_v0  ;;  %346 = vmatprep.subr.mxu1 %v478_v0  ;;  %v163_v18 = vld [vmem:[#allocation7 + $0x40] sm:$0xff]  ;;  %v66_v19 = vld [vmem:[#allocation5 + $0x28] sm:$0xff]  ;;  %v162_v20 = vld [vmem:[#allocation7 + $0x38] sm:$0xff] }
  0x2c   :  { %312 = vmatpush3.msra.mxu0 %v74_v3  ;;  %347 = vmatpush3.msra.mxu1 %v168_v8  ;;  %v65_v21 = vld [vmem:[#allocation5 + $0x20] sm:$0xff]  ;;  %v161_v22 = vld [vmem:[#allocation7 + $0x30] sm:$0xff]  ;;  %v64_v23 = vld [vmem:[#allocation5 + $0x18] sm:$0xff] }
  0x2d   :  { %313 = vmatprep.subr.mxu0 %v478_v0  ;;  %348 = vmatprep.subr.mxu1 %v478_v0  ;;  %v160_v24 = vld [vmem:[#allocation7 + $0x28] sm:$0xff]  ;;  %v63_v25 = vld [vmem:[#allocation5 + $0x10] sm:$0xff]  ;;  %v159_v26 = vld [vmem:[#allocation7 + $0x20] sm:$0xff] }
  0x2e   :  { %314 = vmatpush3.msra.mxu0 %v73_v4  ;;  %349 = vmatpush3.msra.mxu1 %v167_v10  ;;  %v62_v27 = vld [vmem:[#allocation5 + $0x8] sm:$0xff]  ;;  %v158_v28 = vld [vmem:[#allocation7 + $0x18] sm:$0xff]  ;;  %v61_v29 = vld [vmem:[#allocation5] sm:$0xff] }
  0x2f   :  { %315 = vmatprep.subr.mxu0 %v478_v0  ;;  %350 = vmatprep.subr.mxu1 %v478_v0  ;;  %v60_v30 = vld [vmem:[#allocation2] sm:$0xff]  ;;  %v157_v31 = vld [vmem:[#allocation7 + $0x10] sm:$0xff]  ;;  %v156_v32 = vld [vmem:[#allocation7 + $0x8] sm:$0xff] }
  0x30   :  { %316 = vmatpush3.msra.mxu0 %v72_v6  ;;  %351 = vmatpush3.msra.mxu1 %v166_v12  ;;  %v155_v33 = vld [vmem:[#allocation7] sm:$0xff]  ;;  %v271_v34 = vld [vmem:[%s565_s2] ss:$0 sm:$0xff]  ;;  %s447_s2 = scalar_lea.vmem %s262_s12, 128 }
  0x31   :  { %317 = vmatprep.subr.mxu0 %v478_v0  ;;  %352 = vmatprep.subr.mxu1 %v478_v0  ;;  %v272_v39 = vld [vmem:[%s567_s4] ss:$0 sm:$0xff]  ;;  %p448_p1 = scmp.ne.s32.totalorder %s262_s12, %s447_s2  ;;  %p453_p3 = scmp.lt.s32.totalorder %s447_s2, %s447_s2 }
  0x32   :  { %318 = vmatpush3.msra.mxu0 %v71_v9  ;;  %353 = vmatpush3.msra.mxu1 %v165_v14 }
  0x33   :  { %319 = vmatprep.subr.mxu0 %v478_v0  ;;  %354 = vmatprep.subr.mxu1 %v478_v0  ;;  %p454_p4 = por %p453_p3, %p452_p2 }
  0x34   :  { %320 = vmatpush3.msra.mxu0 %v70_v11  ;;  %355 = vmatpush3.msra.mxu1 %v164_v16 }
  0x35   :  { %321 = vmatprep.subr.mxu0 %v478_v0  ;;  %356 = vmatprep.subr.mxu1 %v478_v0  ;;  %p455_p5 = pnand %p454_p4, %p448_p1 }
  0x36   :  { %322 = vmatpush3.msra.mxu0 %v69_v13  ;;  %357 = vmatpush3.msra.mxu1 %v163_v18 }
  0x37   :  { %323 = vmatprep.subr.mxu0 %v478_v0  ;;  %358 = vmatprep.subr.mxu1 %v478_v0 }
  0x38   :  { %324 = vmatpush3.msra.mxu0 %v68_v15  ;;  %359 = vmatpush3.msra.mxu1 %v162_v20 }
  0x39   :  { %325 = vmatprep.subr.mxu0 %v478_v0  ;;  %360 = vmatprep.subr.mxu1 %v478_v0 }
  0x3a   :  { %326 = vmatpush3.msra.mxu0 %v67_v17  ;;  %361 = vmatpush3.msra.mxu1 %v161_v22 }
  0x3b   :  { %327 = vmatprep.subr.mxu0 %v478_v0  ;;  %362 = vmatprep.subr.mxu1 %v478_v0 }
  0x3c   :  { %328 = vmatpush3.msra.mxu0 %v66_v19  ;;  %363 = vmatpush3.msra.mxu1 %v160_v24 }
  0x3d   :  { %329 = vmatprep.subr.mxu0 %v478_v0  ;;  %364 = vmatprep.subr.mxu1 %v478_v0 }
  0x3e   :  { %330 = vmatpush3.msra.mxu0 %v65_v21  ;;  %365 = vmatpush3.msra.mxu1 %v159_v26 }
  0x3f   :  { %331 = vmatprep.subr.mxu0 %v478_v0  ;;  %366 = vmatprep.subr.mxu1 %v478_v0 }
  0x40   :  { %332 = vmatpush3.msra.mxu0 %v64_v23  ;;  %367 = vmatpush3.msra.mxu1 %v158_v28 }
  0x41   :  { %333 = vmatprep.subr.mxu0 %v478_v0  ;;  %368 = vmatprep.subr.mxu1 %v478_v0 }
  0x42   :  { %334 = vmatpush3.msra.mxu0 %v63_v25  ;;  %369 = vmatpush3.msra.mxu1 %v157_v31 }
  0x43   :  { %335 = vmatprep.subr.mxu0 %v478_v0  ;;  %370 = vmatprep.subr.mxu1 %v478_v0 }
  0x44   :  { %336 = vmatpush3.msra.mxu0 %v62_v27  ;;  %371 = vmatpush3.msra.mxu1 %v156_v32 }
  0x45   :  { %337 = vmatprep.subr.mxu0 %v478_v0  ;;  %372 = vmatprep.subr.mxu1 %v478_v0 }
  0x46   :  { %338 = vmatpush3.msra.mxu0 %v61_v29  ;;  %373 = vmatpush3.msra.mxu1 %v155_v33 }
  0x47   :  { %340 = vmatmul.mubr.f32.vlgmr.msra.gmra.mxu0 %v60_v30 }
 0x107   :  { %v150_v35 = vpop.f32.mrf.mxu0 }
 0x108   :  { %v151_v36 = vadd.f32 %v271_v34, %v150_v35 }
 0x109   :  { %v341_v37 = vpop.f32.mrf.mxu0 }
 0x10a   :  { %v154_v38 = vmax.f32 %v151_v36, 0.0 }
 0x10c   :  { %375 = vmatmul.mubr.f32.vlgmr.msra.gmra.mxu1 %v154_v38 }
 0x1cc   :  { %v244_v40 = vpop.f32.mrf.mxu1 }
 0x1cd   :  { %v245_v41 = vadd.f32 %v272_v39, %v244_v40 }
 0x1ce   :  { %v376_v42 = vpop.f32.mrf.mxu1 }
 0x1cf   :  { %v248_v43 = vmul.f32 %v245_v41, %v245_v41 }
 0x1d1   :  { %249 = vadd.xlane.f32.xlu0 %v248_v43 }
 0x25a   :  { %v250_v44 = vpop.xlane.xlu0 %249 }
 0x25b   :  { %v251_v45 = vmax.f32 %v250_v44, 1e-24 }
 0x25d   :  { %385 = vrsqrt.f32 %v251_v45 }
 0x26a   :  { %v386_v46 = vpop.eup %385 }
 0x26b   :  { %v253_v47 = vmul.f32 %v386_v46, %v245_v41 }
 0x26d   :  { %254 = vst [vmem:[#allocation8] sm:$0xff] %v253_v47 }
 0x26e   :  { %458 = shalt.err (!%p455_p5)
}
 0x26f   :  { %264 = dma.vmem_to_hbm [thread:$0]  %s262_s12, 128, %s568_s5, [#allocation4]  }
 0x270   :  { %471 = dma.done.wait [#allocation4], 128  }
 0x271   :  { %472 = vsyncadd [#allocation4], 4294967168 }
 0x272   :  { %268 = vsyncpa [#allocation3], 1 }
 0x273   :  { %269 = vsyncpa [#allocation6], 1 }
 0x274   :  { %270 = vsyncpa [#allocation4], 1 }

</bundles_post_ra>
